<compile_context>
chip_gen: v7x
topology: tpu7x:2x2x1
jax: 0.10.0
libtpu: 0.0.40
codegen_flags: <defaults>
</compile_context>

<pallas_src>
import functools

import numpy as np
import jax
import jax.numpy as jnp
from jax import lax
from jax.experimental import pallas as pl
from jax.experimental.pallas import tpu as pltpu

# ---- config (mirrors the cfg.* fields used by position_embeding) ------------
DEPTH_NUM = 8
POSITION_DIM = 3 * DEPTH_NUM
DEPTH_START = 0.1
DEPTH_END = 2.0
LID = True
POSITION_RANGE = (-1.5, -1.5, 0.0, 1.5, 1.5, 2.5)
EMBED_DIMS = 32
IN_CHANNELS = 4
_EPS = 1e-5  # inverse_sigmoid eps


# ------------------------------- kernel ---------------------------------------
def _kernel(u_ref, v_ref, a_ref, b_ref, k_ref,
            w1_ref, b1_ref, w2_ref, b2_ref,
            norm_ref, emb_ref, *, CHUNK, n_chunks, mxu_dtype):
    """One (lane-tile, camera-view) grid step, channels-first.

    The lane tile is DMA'd as one large block (HBM efficiency) but processed in
    CHUNK-lane sub-slices so the feat/h1 working set stays near vreg-resident.
    """
    a = a_ref[0]            # (C, 1) per-view affine coefficients
    b = b_ref[0]
    k = k_ref[0]
    w1 = w1_ref[...]        # (2E, C)  mxu_dtype
    b1 = b1_ref[...]        # (2E, 1)  f32
    w2 = w2_ref[...]        # (E, 2E)  mxu_dtype
    b2 = b2_ref[...]        # (E, 1)   f32

    def do_chunk(off):
        u = u_ref[:, pl.ds(off, CHUNK)]                 # (1, CHUNK)
        v = v_ref[:, pl.ds(off, CHUNK)]
        # normalized 3D coords, channels-first: (C, CHUNK)
        norm = a * u + b * v + k
        norm_ref[0, :, pl.ds(off, CHUNK)] = norm
        # inverse_sigmoid: single clip into [eps, 1-eps] (equivalent to
        # clip(0,1)+max(eps,.) to within eps); one log + one EUP approx recip.
        xc = jnp.clip(norm, _EPS, 1.0 - _EPS)
        feat = jnp.log(xc * pl.reciprocal(1.0 - xc, approx=True)).astype(mxu_dtype)
        # position_encoder: Conv1x1(3D->2E) -> ReLU -> Conv1x1(2E->E),
        # mxu_dtype operands, f32 accumulation, f32 biases.
        h1 = jnp.dot(w1, feat, preferred_element_type=jnp.float32) + b1
        h1 = jnp.maximum(h1, 0.0).astype(mxu_dtype)
        emb = jnp.dot(w2, h1, preferred_element_type=jnp.float32) + b2
        emb_ref[0, :, pl.ds(off, CHUNK)] = emb.astype(emb_ref.dtype)

    if n_chunks == 1:
        do_chunk(0)
    else:
        def body(c, carry):
            do_chunk(pl.multiple_of(c * CHUNK, CHUNK))
            return carry
        lax.fori_loop(0, n_chunks, body, 0, unroll=True)


# --------------------------- tiling / planning --------------------------------
def _round_up(x, m):
    return (x + m - 1) // m * m


def _tile_plan(HW, BN):
    """Generation-aware lane tiling: big DMA tiles, padded HW, even grid."""
    try:
        vmem_cap = int(pltpu.get_tpu_info().vmem_capacity_bytes)
    except Exception:
        vmem_cap = 0
    if vmem_cap >= (100 << 20):
        # v5e/v6e: 128 MiB physical VMEM -> very large lane tiles; raise the
        # scoped limit (v5e default is only 16 MiB, v6e 32 MiB).
        max_tile, vmem_limit = 32768, 64 << 20
    else:
        # v7x (64 MiB VMEM) or unknown backend: 16K lanes double-buffered is
        # ~8 MB of blocks, well inside the default 32 MiB scoped VMEM.
        max_tile, vmem_limit = 16384, None

    tile = min(max_tile, _round_up(HW, 128))
    hw_pad = _round_up(HW, tile)
    n_t = hw_pad // tile
    # Keep the "parallel" grid even so it splits across v7x's 2 TensorCores.
    if (n_t * BN) % 2 == 1 and tile % 256 == 0:
        tile //= 2
        n_t = hw_pad // tile
    # In-kernel lane sub-chunk (bounds the compute working set).
    if tile % 512 == 0:
        chunk = 512
    elif tile % 256 == 0:
        chunk = 256
    else:
        chunk = 128
    chunk = min(chunk, tile)
    return tile, hw_pad, n_t, chunk, vmem_limit


# ------------------------------- wrapper ---------------------------------------
def position_embeding_pallas(img_feat_shape, cam_intr, cam_extr, inp_img_shape, params,
                             mxu_dtype=jnp.bfloat16, emb_dtype=jnp.float32):
    """Returns (coords_position_embeding, coords3d, coords3d_absolute, coords_mask)
    with the same shapes/semantics as BasePointEmbedHead.position_embeding.

    mxu_dtype: operand dtype of the two 1x1-conv matmuls (accumulation always
               f32).  bf16 is single-pass on the MXU; float32 gives strict
               parity with the PyTorch reference.
    emb_dtype: storage dtype of the returned position embedding.
    """
    BN, _, H, W = img_feat_shape
    inp_h, inp_w = inp_img_shape
    HW = H * W
    Dn = DEPTH_NUM
    C = 3 * Dn
    E = EMBED_DIMS
    TILE, HW_pad, n_t, CHUNK, vmem_limit = _tile_plan(HW, BN)

    # -------- glue: index-derived constant tables (no data compute) ----------
    coords_h = jnp.arange(H, dtype=jnp.float32) * (inp_h / H)
    coords_w = jnp.arange(W, dtype=jnp.float32) * (inp_w / W)
    u_row = jnp.tile(coords_w, (H,))                 # u of flat index r = r % W
    v_row = jnp.repeat(coords_h, W)                  # v of flat index r = r // W
    if HW_pad != HW:                                 # pad to a TILE multiple
        u_row = jnp.pad(u_row, (0, HW_pad - HW))
        v_row = jnp.pad(v_row, (0, HW_pad - HW))
    u_row = u_row.reshape(1, HW_pad)
    v_row = v_row.reshape(1, HW_pad)

    idx = jnp.arange(Dn, dtype=jnp.float32)
    if LID:
        bin_size = (DEPTH_END - DEPTH_START) / (Dn * (1 + Dn))
        coords_d = DEPTH_START + bin_size * idx * (idx + 1.0)
    else:
        bin_size = (DEPTH_END - DEPTH_START) / Dn
        coords_d = DEPTH_START + bin_size * idx

    # channel c = dIdx*3 + kcoord (depth-major, xyz fastest) -- matches the
    # PyTorch permute(0,3,4,2,1).view(BN, 3D, H, W) channel order.
    k_col = np.tile(np.arange(3), Dn)                # (C,) coordinate index
    d_col = jnp.repeat(coords_d, 3)                  # (C,) depth per channel

    pr = jnp.asarray(POSITION_RANGE, jnp.float32)
    lo = pr[:3][k_col]                               # (C,)
    hi = pr[3:][k_col]
    inv_rng = 1.0 / (hi - lo)

    # fold intrinsics + extrinsics + depth + normalization into per-view
    # per-channel affine coefficients:  norm[c, r] = nA*u + nB*v + nK
    fx = cam_intr[:, 0, 0][:, None]
    fy = cam_intr[:, 1, 1][:, None]
    cx = cam_intr[:, 0, 2][:, None]
    cy = cam_intr[:, 1, 2][:, None]
    EX = cam_extr[:, k_col, :]                       # (BN, C, 4): extrinsic row k
    E0, E1, E2, E3 = EX[..., 0], EX[..., 1], EX[..., 2], EX[..., 3]
    d_b = d_col[None, :]
    A = E0 * d_b / fx
    B = E1 * d_b / fy
    K = d_b * (E2 - E0 * cx / fx - E1 * cy / fy) + E3     # absolute-coord constant
    nA = (A * inv_rng[None, :]).astype(jnp.float32).reshape(BN, C, 1)
    nB = (B * inv_rng[None, :]).astype(jnp.float32).reshape(BN, C, 1)
    nK = ((K - lo[None, :]) * inv_rng[None, :]).astype(jnp.float32).reshape(BN, C, 1)

    # position_encoder parameters (1x1 convs), channels-first
    w1, b1, w2, b2 = params                          # (2E,C), (2E,), (E,2E), (E,)
    w1 = w1.astype(mxu_dtype)
    w2 = w2.astype(mxu_dtype)
    b1 = b1.reshape(2 * E, 1).astype(jnp.float32)
    b2 = b2.reshape(E, 1).astype(jnp.float32)

    kernel = functools.partial(_kernel, CHUNK=CHUNK, n_chunks=TILE // CHUNK,
                               mxu_dtype=mxu_dtype)

    norm, emb = pl.pallas_call(
        kernel,
        out_shape=(
            jax.ShapeDtypeStruct((BN, C, HW_pad), jnp.float32),   # normalized coords
            jax.ShapeDtypeStruct((BN, E, HW_pad), emb_dtype),     # position embedding
        ),
        # BN innermost: u/v blocks depend only on t, so their DMA is elided
        # across the inner camera-view iterations.
        grid=(n_t, BN),
        in_specs=[
            pl.BlockSpec((1, TILE), lambda t, b: (0, t)),          # u
            pl.BlockSpec((1, TILE), lambda t, b: (0, t)),          # v
            pl.BlockSpec((1, C, 1), lambda t, b: (b, 0, 0)),       # nA (per view)
            pl.BlockSpec((1, C, 1), lambda t, b: (b, 0, 0)),       # nB
            pl.BlockSpec((1, C, 1), lambda t, b: (b, 0, 0)),       # nK
            pl.BlockSpec((2 * E, C), lambda t, b: (0, 0)),         # w1
            pl.BlockSpec((2 * E, 1), lambda t, b: (0, 0)),         # b1
            pl.BlockSpec((E, 2 * E), lambda t, b: (0, 0)),         # w2
            pl.BlockSpec((E, 1), lambda t, b: (0, 0)),             # b2
        ],
        out_specs=(
            pl.BlockSpec((1, C, TILE), lambda t, b: (b, 0, t)),
            pl.BlockSpec((1, E, TILE), lambda t, b: (b, 0, t)),
        ),
        compiler_params=pltpu.CompilerParams(
            dimension_semantics=("parallel", "parallel"),
            vmem_limit_bytes=vmem_limit),
    )(u_row, v_row, nA, nB, nK, w1, b1, w2, b2)

    if HW_pad != HW:
        norm = norm[:, :, :HW]
        emb = emb[:, :, :HW]

    # -------- glue: back to the PyTorch layouts -------------------------------
    # NOTE: the (BN,W,H,D,3) transpose + absolute/mask reconstruction below is
    # lane-hostile XLA glue kept only for strict layout parity with the PyTorch
    # module; consumers that accept channels-first should take `emb`
    # ((BN,E,H,W)) and `norm` ((BN,3D,HW)) directly and skip this block.
    pos_embed = emb.reshape(BN, E, H, W)                                      # NCHW
    coords3d = jnp.transpose(norm.reshape(BN, Dn, 3, H, W), (0, 4, 3, 1, 2))  # (BN,W,H,D,3)
    lo3 = pr[:3].reshape(1, 1, 1, 1, 3)
    rng3 = (pr[3:] - pr[:3]).reshape(1, 1, 1, 1, 3)
    coords3d_abs = coords3d * rng3 + lo3                                      # f32 reconstruction
    coords_mask = (coords3d > 1.0) | (coords3d < 0.0)
    return pos_embed, coords3d, coords3d_abs, coords_mask


# ------------------------------ pure-JAX reference ----------------------------
def reference(cam_intr, cam_extr, inp_img_shape, H, W, params):
    BN = cam_intr.shape[0]
    inp_h, inp_w = inp_img_shape
    D = DEPTH_NUM
    coords_h = jnp.arange(H, dtype=jnp.float32) * inp_h / H
    coords_w = jnp.arange(W, dtype=jnp.float32) * inp_w / W
    idx = jnp.arange(D, dtype=jnp.float32)
    if LID:
        bin_size = (DEPTH_END - DEPTH_START) / (D * (1 + D))
        coords_d = DEPTH_START + bin_size * idx * (idx + 1.0)
    else:
        bin_size = (DEPTH_END - DEPTH_START) / D
        coords_d = DEPTH_START + bin_size * idx
    mesh = jnp.stack(jnp.meshgrid(coords_w, coords_h, coords_d, indexing='ij'), axis=-1)  # (W,H,D,3)
    fx = cam_intr[:, 0, 0]; fy = cam_intr[:, 1, 1]
    cx = cam_intr[:, 0, 2]; cy = cam_intr[:, 1, 2]
    cam_param = jnp.stack([fx, fy, cx, cy], axis=-1).reshape(BN, 1, 1, 1, 4)
    uv = mesh[None, ..., :2]
    dd = mesh[None, ..., 2:3]
    uvn = (uv - cam_param[..., 2:4]) / cam_param[..., :2]
    xy = uvn * dd
    z = jnp.broadcast_to(dd, (BN, W, H, D, 1))
    xy = jnp.broadcast_to(xy, (BN, W, H, D, 2))
    c3 = jnp.concatenate([xy, z], -1)
    c4 = jnp.concatenate([c3, jnp.ones_like(c3[..., :1])], -1)[..., None]
    EX = cam_extr.reshape(BN, 1, 1, 1, 4, 4)
    coords3d_abs = jnp.matmul(EX, c4)[..., 0][..., :3]
    pr = POSITION_RANGE
    norm = jnp.stack([
        (coords3d_abs[..., 0] - pr[0]) / (pr[3] - pr[0]),
        (coords3d_abs[..., 1] - pr[1]) / (pr[4] - pr[1]),
        (coords3d_abs[..., 2] - pr[2]) / (pr[5] - pr[2])], -1)
    mask = (norm > 1.0) | (norm < 0.0)
    feat = jnp.transpose(norm, (0, 3, 4, 2, 1)).reshape(BN, 3 * D, H, W)
    xcl = jnp.clip(feat, 0.0, 1.0)
    feat = jnp.log(jnp.maximum(xcl, _EPS)) - jnp.log(jnp.maximum(1.0 - xcl, _EPS))
    w1, b1, w2, b2 = params   # (2E,C), (2E,), (E,2E), (E,)
    h1 = jnp.einsum('bchw,ec->behw', feat, w1) + b1.reshape(1, -1, 1, 1)
    h1 = jnp.maximum(h1, 0.0)
    out = jnp.einsum('bchw,ec->behw', h1, w2) + b2.reshape(1, -1, 1, 1)
    return out, norm, coords3d_abs, mask


if __name__ == "__main__":
    key = jax.random.PRNGKey(0)
    BN, H, W = 2, 16, 16                      # B=1 batch with 2 camera views
    inp_img_shape = (64, 64)
    img_feat = jax.random.normal(key, (BN, IN_CHANNELS, H, W), jnp.float32)  # shape source

    # deterministic camera intrinsics / extrinsics
    fx = jnp.array([60.0, 70.0]); fy = jnp.array([62.0, 68.0])
    cx = jnp.array([31.0, 33.0]); cy = jnp.array([30.0, 34.0])
    cam_intr = (jnp.zeros((BN, 3, 3), jnp.float32)
                .at[:, 0, 0].set(fx).at[:, 1, 1].set(fy)
                .at[:, 0, 2].set(cx).at[:, 1, 2].set(cy).at[:, 2, 2].set(1.0))

    def rot_z(t):
        c, s = np.cos(t), np.sin(t)
        return np.array([[c, -s, 0, 0], [s, c, 0, 0], [0, 0, 1, 0], [0, 0, 0, 1]], np.float32)
    e0 = rot_z(0.1);  e0[:3, 3] = [0.05, -0.10, 0.20]
    e1 = rot_z(-0.2); e1[:3, 3] = [-0.10, 0.15, 0.10]
    cam_extr = jnp.asarray(np.stack([e0, e1]))

    # deterministic position_encoder parameters (1x1 convs, channels-first layout)
    C, E = POSITION_DIM, EMBED_DIMS
    k1, k2, k3, k4 = jax.random.split(key, 4)
    w1 = jax.random.normal(k1, (2 * E, C), jnp.float32) * 0.05
    b1 = jax.random.normal(k2, (2 * E,), jnp.float32) * 0.01
    w2 = jax.random.normal(k3, (E, 2 * E), jnp.float32) * 0.05
    b2 = jax.random.normal(k4, (E,), jnp.float32) * 0.01
    params = (w1, b1, w2, b2)

    refs = reference(cam_intr, cam_extr, inp_img_shape, H, W, params)

    # 1) strict-parity path: f32 MXU operands, tight tolerance vs f32 reference.
    outs32 = position_embeding_pallas(img_feat.shape, cam_intr, cam_extr, inp_img_shape,
                                      params, mxu_dtype=jnp.float32)
    outs32 = jax.block_until_ready(outs32)
    for o, r in zip(outs32[:3], refs[:3]):
        np.testing.assert_allclose(np.asarray(o), np.asarray(r), atol=2e-3, rtol=2e-3)
    assert outs32[3].shape == (BN, W, H, DEPTH_NUM, 3) and outs32[3].dtype == jnp.bool_

    # 2) production path: bf16 MXU operands (f32 accumulation). The embedding is
    #    checked at a bf16-appropriate tolerance; the f32 coordinate outputs stay
    #    at the tight tolerance (unaffected by the MXU dtype).
    outs16 = position_embeding_pallas(img_feat.shape, cam_intr, cam_extr, inp_img_shape,
                                      params, mxu_dtype=jnp.bfloat16)
    outs16 = jax.block_until_ready(outs16)
    np.testing.assert_allclose(np.asarray(outs16[0]), np.asarray(refs[0]), atol=3e-2, rtol=3e-2)
    np.testing.assert_allclose(np.asarray(outs16[1]), np.asarray(refs[1]), atol=2e-3, rtol=2e-3)
    np.testing.assert_allclose(np.asarray(outs16[2]), np.asarray(refs[2]), atol=2e-3, rtol=2e-3)
    assert outs16[3].shape == (BN, W, H, DEPTH_NUM, 3) and outs16[3].dtype == jnp.bool_

    print("KERNEL_OK")
</pallas_src>

<mosaic_0001>
module attributes {stable_mosaic.version = 11 : i64} {
  func.func @_kernel(%arg0: i32, %arg1: i32, %arg2: memref<1x256xf32, #tpu.memory_space<vmem>>, %arg3: memref<1x256xf32, #tpu.memory_space<vmem>>, %arg4: memref<1x24x1xf32, #tpu.memory_space<vmem>>, %arg5: memref<1x24x1xf32, #tpu.memory_space<vmem>>, %arg6: memref<1x24x1xf32, #tpu.memory_space<vmem>>, %arg7: memref<64x24xf32, #tpu.memory_space<vmem>>, %arg8: memref<64x1xf32, #tpu.memory_space<vmem>>, %arg9: memref<32x64xf32, #tpu.memory_space<vmem>>, %arg10: memref<32x1xf32, #tpu.memory_space<vmem>>, %arg11: memref<1x24x256xf32, #tpu.memory_space<vmem>>, %arg12: memref<1x32x256xf32, #tpu.memory_space<vmem>>) attributes {dimension_semantics = [#tpu.dimension_semantics<parallel>, #tpu.dimension_semantics<parallel>], iteration_bounds = array<i64: 1, 2>, scalar_prefetch = 0 : i64, scratch_operands = 0 : i64, tpu.core_type = #tpu.core_type<tc>, window_params = [{transform_indices = @transform_0, window_bounds = array<i64: 1, 256>}, {transform_indices = @transform_1, window_bounds = array<i64: 1, 256>}, {transform_indices = @transform_2, window_bounds = array<i64: 1, 24, 1>}, {transform_indices = @transform_3, window_bounds = array<i64: 1, 24, 1>}, {transform_indices = @transform_4, window_bounds = array<i64: 1, 24, 1>}, {pipeline_mode = #tpu.pipeline_mode<synchronous>, transform_indices = @transform_5, window_bounds = array<i64: 64, 24>}, {pipeline_mode = #tpu.pipeline_mode<synchronous>, transform_indices = @transform_6, window_bounds = array<i64: 64, 1>}, {pipeline_mode = #tpu.pipeline_mode<synchronous>, transform_indices = @transform_7, window_bounds = array<i64: 32, 64>}, {pipeline_mode = #tpu.pipeline_mode<synchronous>, transform_indices = @transform_8, window_bounds = array<i64: 32, 1>}, {transform_indices = @transform_9, window_bounds = array<i64: 1, 24, 256>}, {transform_indices = @transform_10, window_bounds = array<i64: 1, 32, 256>}]} {
    %c0 = arith.constant 0 : index
    %c0_0 = arith.constant 0 : index
    %c0_1 = arith.constant 0 : index
    %0 = vector.load %arg4[%c0, %c0_0, %c0_1] : memref<1x24x1xf32, #tpu.memory_space<vmem>>, vector<1x24x1xf32>
    %1 = vector.shape_cast %0 : vector<1x24x1xf32> to vector<24x1xf32>
    %c0_2 = arith.constant 0 : index
    %c0_3 = arith.constant 0 : index
    %c0_4 = arith.constant 0 : index
    %2 = vector.load %arg5[%c0_2, %c0_3, %c0_4] : memref<1x24x1xf32, #tpu.memory_space<vmem>>, vector<1x24x1xf32>
    %3 = vector.shape_cast %2 : vector<1x24x1xf32> to vector<24x1xf32>
    %c0_5 = arith.constant 0 : index
    %c0_6 = arith.constant 0 : index
    %c0_7 = arith.constant 0 : index
    %4 = vector.load %arg6[%c0_5, %c0_6, %c0_7] : memref<1x24x1xf32, #tpu.memory_space<vmem>>, vector<1x24x1xf32>
    %5 = vector.shape_cast %4 : vector<1x24x1xf32> to vector<24x1xf32>
    %c0_8 = arith.constant 0 : index
    %c0_9 = arith.constant 0 : index
    %6 = vector.load %arg7[%c0_8, %c0_9] : memref<64x24xf32, #tpu.memory_space<vmem>>, vector<64x24xf32>
    %c0_10 = arith.constant 0 : index
    %c0_11 = arith.constant 0 : index
    %7 = vector.load %arg8[%c0_10, %c0_11] : memref<64x1xf32, #tpu.memory_space<vmem>>, vector<64x1xf32>
    %c0_12 = arith.constant 0 : index
    %c0_13 = arith.constant 0 : index
    %8 = vector.load %arg9[%c0_12, %c0_13] : memref<32x64xf32, #tpu.memory_space<vmem>>, vector<32x64xf32>
    %c0_14 = arith.constant 0 : index
    %c0_15 = arith.constant 0 : index
    %9 = vector.load %arg10[%c0_14, %c0_15] : memref<32x1xf32, #tpu.memory_space<vmem>>, vector<32x1xf32>
    %c0_16 = arith.constant 0 : index
    %c0_17 = arith.constant 0 : index
    %10 = vector.load %arg2[%c0_16, %c0_17] : memref<1x256xf32, #tpu.memory_space<vmem>>, vector<1x256xf32>
    %c0_18 = arith.constant 0 : index
    %c0_19 = arith.constant 0 : index
    %11 = vector.load %arg3[%c0_18, %c0_19] : memref<1x256xf32, #tpu.memory_space<vmem>>, vector<1x256xf32>
    %12 = vector.broadcast %1 : vector<24x1xf32> to vector<24x256xf32>
    %13 = vector.broadcast %10 : vector<1x256xf32> to vector<24x256xf32>
    %14 = arith.mulf %12, %13 : vector<24x256xf32>
    %15 = vector.broadcast %3 : vector<24x1xf32> to vector<24x256xf32>
    %16 = vector.broadcast %11 : vector<1x256xf32> to vector<24x256xf32>
    %17 = arith.mulf %15, %16 : vector<24x256xf32>
    %18 = arith.addf %14, %17 : vector<24x256xf32>
    %19 = vector.broadcast %5 : vector<24x1xf32> to vector<24x256xf32>
    %20 = arith.addf %18, %19 : vector<24x256xf32>
    %c0_20 = arith.constant 0 : index
    %c0_21 = arith.constant 0 : index
    %c0_22 = arith.constant 0 : index
    %21 = vector.load %arg11[%c0_20, %c0_21, %c0_22] : memref<1x24x256xf32, #tpu.memory_space<vmem>>, vector<1x24x256xf32>
    %22 = vector.shape_cast %21 : vector<1x24x256xf32> to vector<24x256xf32>
    %23 = vector.shape_cast %20 : vector<24x256xf32> to vector<1x24x256xf32>
    tpu.vector_store %arg11[%c0_20, %c0_21, %c0_22], %23 {strides = array<i32>} : memref<1x24x256xf32, #tpu.memory_space<vmem>>, vector<1x24x256xf32>,
    %cst = arith.constant 9.99999974E-6 : f32
    %cst_23 = arith.constant 0.999989986 : f32
    %24 = vector.broadcast %cst : f32 to vector<24x256xf32>
    %25 = arith.maximumf %24, %20 : vector<24x256xf32>
    %26 = vector.broadcast %cst_23 : f32 to vector<24x256xf32>
    %27 = arith.minimumf %26, %25 : vector<24x256xf32>
    %cst_24 = arith.constant 1.000000e+00 : f32
    %28 = vector.broadcast %cst_24 : f32 to vector<24x256xf32>
    %29 = arith.subf %28, %27 : vector<24x256xf32>
    %30 = tpu.reciprocal %29 {approx = true} : vector<24x256xf32> -> vector<24x256xf32>
    %31 = arith.mulf %27, %30 : vector<24x256xf32>
    %32 = math.log %31 : vector<24x256xf32>
    %cst_25 = arith.constant dense<0.000000e+00> : vector<64x256xf32>
    %33 = tpu.matmul %6, %32, %cst_25 {dimension_numbers = #tpu.dot_dimension_numbers<[1], [0], [0], [1], [0, 0, 1, 1], [], []>} : vector<64x24xf32>, vector<24x256xf32>, vector<64x256xf32> -> vector<64x256xf32>
    %34 = vector.broadcast %7 : vector<64x1xf32> to vector<64x256xf32>
    %35 = arith.addf %33, %34 : vector<64x256xf32>
    %cst_26 = arith.constant 0.000000e+00 : f32
    %36 = vector.broadcast %cst_26 : f32 to vector<64x256xf32>
    %37 = arith.maximumf %35, %36 : vector<64x256xf32>
    %cst_27 = arith.constant dense<0.000000e+00> : vector<32x256xf32>
    %38 = tpu.matmul %8, %37, %cst_27 {dimension_numbers = #tpu.dot_dimension_numbers<[1], [0], [0], [1], [0, 0, 1, 1], [], []>} : vector<32x64xf32>, vector<64x256xf32>, vector<32x256xf32> -> vector<32x256xf32>
    %39 = vector.broadcast %9 : vector<32x1xf32> to vector<32x256xf32>
    %40 = arith.addf %38, %39 : vector<32x256xf32>
    %c0_28 = arith.constant 0 : index
    %c0_29 = arith.constant 0 : index
    %c0_30 = arith.constant 0 : index
    %41 = vector.load %arg12[%c0_28, %c0_29, %c0_30] : memref<1x32x256xf32, #tpu.memory_space<vmem>>, vector<1x32x256xf32>
    %42 = vector.shape_cast %41 : vector<1x32x256xf32> to vector<32x256xf32>
    %43 = vector.shape_cast %40 : vector<32x256xf32> to vector<1x32x256xf32>
    tpu.vector_store %arg12[%c0_28, %c0_29, %c0_30], %43 {strides = array<i32>} : memref<1x32x256xf32, #tpu.memory_space<vmem>>, vector<1x32x256xf32>,
    return
  }
  func.func @transform_0(%arg0: i32, %arg1: i32) -> (i32, i32) {
    %c0_i32 = arith.constant 0 : i32
    %c0_i32_0 = arith.constant 0 : i32
    return %c0_i32, %arg0 : i32, i32
  }
  func.func @transform_1(%arg0: i32, %arg1: i32) -> (i32, i32) {
    %c0_i32 = arith.constant 0 : i32
    %c0_i32_0 = arith.constant 0 : i32
    return %c0_i32, %arg0 : i32, i32
  }
  func.func @transform_2(%arg0: i32, %arg1: i32) -> (i32, i32, i32) {
    %c0_i32 = arith.constant 0 : i32
    %c0_i32_0 = arith.constant 0 : i32
    %c0_i32_1 = arith.constant 0 : i32
    return %arg1, %c0_i32, %c0_i32_0 : i32, i32, i32
  }
  func.func @transform_3(%arg0: i32, %arg1: i32) -> (i32, i32, i32) {
    %c0_i32 = arith.constant 0 : i32
    %c0_i32_0 = arith.constant 0 : i32
    %c0_i32_1 = arith.constant 0 : i32
    return %arg1, %c0_i32, %c0_i32_0 : i32, i32, i32
  }
  func.func @transform_4(%arg0: i32, %arg1: i32) -> (i32, i32, i32) {
    %c0_i32 = arith.constant 0 : i32
    %c0_i32_0 = arith.constant 0 : i32
    %c0_i32_1 = arith.constant 0 : i32
    return %arg1, %c0_i32, %c0_i32_0 : i32, i32, i32
  }
  func.func @transform_5(%arg0: i32, %arg1: i32) -> (i32, i32) {
    %c0_i32 = arith.constant 0 : i32
    %c0_i32_0 = arith.constant 0 : i32
    %c0_i32_1 = arith.constant 0 : i32
    return %c0_i32, %c0_i32_0 : i32, i32
  }
  func.func @transform_6(%arg0: i32, %arg1: i32) -> (i32, i32) {
    %c0_i32 = arith.constant 0 : i32
    %c0_i32_0 = arith.constant 0 : i32
    %c0_i32_1 = arith.constant 0 : i32
    return %c0_i32, %c0_i32_0 : i32, i32
  }
  func.func @transform_7(%arg0: i32, %arg1: i32) -> (i32, i32) {
    %c0_i32 = arith.constant 0 : i32
    %c0_i32_0 = arith.constant 0 : i32
    %c0_i32_1 = arith.constant 0 : i32
    return %c0_i32, %c0_i32_0 : i32, i32
  }
  func.func @transform_8(%arg0: i32, %arg1: i32) -> (i32, i32) {
    %c0_i32 = arith.constant 0 : i32
    %c0_i32_0 = arith.constant 0 : i32
    %c0_i32_1 = arith.constant 0 : i32
    return %c0_i32, %c0_i32_0 : i32, i32
  }
  func.func @transform_9(%arg0: i32, %arg1: i32) -> (i32, i32, i32) {
    %c0_i32 = arith.constant 0 : i32
    %c0_i32_0 = arith.constant 0 : i32
    return %arg1, %c0_i32, %arg0 : i32, i32, i32
  }
  func.func @transform_10(%arg0: i32, %arg1: i32) -> (i32, i32, i32) {
    %c0_i32 = arith.constant 0 : i32
    %c0_i32_0 = arith.constant 0 : i32
    return %arg1, %c0_i32, %arg0 : i32, i32, i32
  }
}

</mosaic_0001>

<bundles_post_ra>
// kernel: tpu_custom_call.1
= control target key start
LH: loop header
LB: loop body
LE: loop exit
PB: predicated region body
PF: predicated region fallthrough
CT: control target
= control target key end

     0   :  { %16 = vsyncpa [#allocation3], 0  ;;  %s1744_s0 = inlined_call_operand.vmem [shape: f32[1,256], index: 0, kind: input, shape index: {}]   ;;  %s1745_s1 = inlined_call_operand.vmem [shape: f32[1,256], index: 1, kind: input, shape index: {}]   ;;  %s1746_s2 = inlined_call_operand.vmem [shape: f32[2,24,1], index: 2, kind: input, shape index: {}]   ;;  %s1747_s3 = inlined_call_operand.vmem [shape: f32[2,24,1], index: 3, kind: input, shape index: {}]   ;;  %s1748_s4 = inlined_call_operand.vmem [shape: f32[2,24,1], index: 4, kind: input, shape index: {}]   ;;  %s1749_s5 = inlined_call_operand.vmem [shape: f32[64,24], index: 5, kind: input, shape index: {}]   ;;  %s1750_s6 = inlined_call_operand.vmem [shape: f32[64,1], index: 6, kind: input, shape index: {}]   ;;  %s1751_s7 = inlined_call_operand.vmem [shape: f32[32,64], index: 7, kind: input, shape index: {}]   ;;  %s1752_s8 = inlined_call_operand.vmem [shape: f32[32,1], index: 8, kind: input, shape index: {}]   ;;  %s1753_s9 = inlined_call_operand.hbm [shape: f32[2,24,256], index: 9, kind: output, shape index: {0}]   ;;  %s1754_s10 = inlined_call_operand.hbm [shape: f32[2,32,256], index: 10, kind: output, shape index: {1}]  }
   0x1   :  { %18 = vsyncpa [#allocation3 + $0x1], 0 }
   0x2   :  { %19 = vsyncpa [#allocation5], 0 }
   0x3   :  { %21 = vsyncpa [#allocation5 + $0x1], 0  ;;  %s1474_s13 = smov 0   ;;  %s1476_s14 = smov 0  }
   0x4   :  { %s1478_s15 = smov 0   ;;  %s1480_s16 = smov 0  }
   0x5   :  { %s1482_s17 = smov 0   ;;  %s1484_s18 = smov 0  }
   0x6 LB: > { %s1158_s19 = sadd.s32 4294967295, %s1411_s18   ;;  %s1159_s20 = sadd.s32 4294967294, %s1411_s18   ;;  %s1411_s18 = sphi %s1484_s18, %s27_s18   ;;  %s1407_s17 = sphi %s1482_s17, %s1769_s17   ;;  %s1403_s16 = sphi %s1480_s16, %s1768_s16   ;;  %s1399_s15 = sphi %s1478_s15, %s1767_s15   ;;  %s1395_s14 = sphi %s1476_s14, %s1766_s14   ;;  %s1391_s13 = sphi %s1474_s13, %s1765_s13  }
   0x7   : > { %s36_s21 = sadd.s32 1, %s1407_s17  ;;  %s262_s22 = sadd.s32 1, %s1399_s15 }
   0x8   : > { %p37_p0 = scmp.ge.s32.totalorder %s36_s21, 2  ;;  %p272_p1 = scmp.ne.s32.totalorder %s1399_s15, %s1395_s14 }
   0x9   : > { %p273_p2 = scmp.eq.s32.totalorder %s1158_s19, 1  ;;  %p278_p3 = scmp.ne.s32.totalorder %s1395_s14, %s1391_s13 }
   0xa   : > { %s1771_s21 = smov (%p37_p0, %s36_s21), 0  ;;  %p279_p5 = scmp.eq.s32.totalorder %s1159_s20, 1 }
   0xb   : > { %1758 = sst [smem:[#allocation8_spill]] %s1771_s21  ;;  %p1514_p4 = por %p273_p2, %p272_p1 }
   0xc   : > { %s257_s24 = ssub.s32 %s1407_s17, %s1771_s21  ;;  %p1164_p6 = scmp.ge.s32.totalorder %s1411_s18, 1 }
   0xd   : > { %p260_p7 = scmp.eq.s32.totalorder %s257_s24, 0  ;;  %p1521_p8 = por %p279_p5, %p278_p3 }
   0xe   : > { %p377_p9 = scmp.lt.s32.totalorder %s1411_s18, 3 }
   0xf   : > { %s1527_s26 = scalar_select %p260_p7, %s1399_s15, %s262_s22  }
  0x10   : > { %p378_p10 = pnand %p1164_p6, %p377_p9 }
  0x11   : > { %p448_p11 = scmp.lt.s32.totalorder (!%p378_p10), %s1403_s16, 1  ;;  %v1413_v0 = vmov (!%p378_p10), 0   ;;  %v482_v9 = vld [vmem:[%s1750_s6] sm:$0xff] (!%p378_p10)  ;;  %v484_v11 = vld [vmem:[%s1750_s6 + $0x10] sm:$0xff] (!%p378_p10)  ;;  %v483_v12 = vld [vmem:[%s1750_s6 + $0x8] sm:$0xff] (!%p378_p10)  ;;  %v1414_v22 = vmov (!%p378_p10), 0.0   ;;  %v516_v23 = vlaneseq (!%p378_p10) }
  0x12   : > { %381 = sbr.rel (%p378_p10) target bundleno = 706 (0x2c2), region = 56  ;;  %1276 = vset.pattern.permute.xlu1 (!%p378_p10), %v1413_v0  ;;  %1275 = vset.pattern.permute.xlu0 (!%p378_p10), %v1413_v0  ;;  %v486_v13 = vld [vmem:[%s1750_s6 + $0x20] sm:$0xff] (!%p378_p10)  ;;  %v485_v14 = vld [vmem:[%s1750_s6 + $0x18] sm:$0xff] (!%p378_p10)  ;;  %v488_v15 = vld [vmem:[%s1750_s6 + $0x30] sm:$0xff] (!%p378_p10)  ;;  %vm679_vm0 = vcmask (!%p378_p10), 195584   ;;  %vm853_vm1 = vcmask (!%p378_p10), 523264  }
  0x13   : > { %v487_v16 = vld [vmem:[%s1750_s6 + $0x28] sm:$0xff] (!%p378_p10)  ;;  %v494_v17 = vld [vmem:[%s1752_s8] sm:$0xff] (!%p378_p10)  ;;  %v489_v18 = vld [vmem:[%s1750_s6 + $0x38] sm:$0xff] (!%p378_p10)  ;;  %768 = vmatprep.mubr.f32.mxu0 (!%p378_p10), %v1414_v22  ;;  %930 = vmatprep.mubr.f32.mxu1 (!%p378_p10), %v1414_v22  ;;  %v517_v24 = vshrl.u32 (!%p378_p10), %v516_v23, 7  ;;  %s1210_s19 = smul.u32 (!%p378_p10), 768, %s1403_s16  ;;  %s1415_s30 = smov (!%p378_p10), [#allocation2]  }
  0x14   : > { %v496_v19 = vld [vmem:[%s1752_s8 + $0x10] sm:$0xff] (!%p378_p10)  ;;  %v495_v20 = vld [vmem:[%s1752_s8 + $0x8] sm:$0xff] (!%p378_p10)  ;;  %v497_v21 = vld [vmem:[%s1752_s8 + $0x18] sm:$0xff] (!%p378_p10)  ;;  %s1305_s12 = sshll.u32 (!%p378_p10), %s1415_s30, 4  ;;  %s1306_s12 = int_to_ptr.vmem [resolvable:$false] %s1305_s12 }
  0x15   : > { %v518_v25 = vsub.s32 (!%p378_p10), 0, %v517_v24  ;;  %v522_v26 = vsub.s32 (!%p378_p10), 1, %v517_v24  ;;  %v499_v27 = vld [vmem:[%s1745_s1] sm:$0x3] (!%p378_p10) }
  0x16   : > { %v498_v28 = vld [vmem:[%s1744_s0] sm:$0x3] (!%p378_p10) }
  0x17   : > { %v551_v29 = vrot.slane (!%p378_p10), %v499_v27, %v518_v25  ;;  %v555_v30 = vrot.slane (!%p378_p10), %v499_v27, %v522_v26  ;;  %v519_v31 = vrot.slane (!%p378_p10), %v498_v28, %v518_v25  ;;  %v523_v32 = vrot.slane (!%p378_p10), %v498_v28, %v522_v26 }
  0x19   : > { %s449_s27 = scalar_select %p448_p11, %s1403_s16, 1 }
  0x1b   : > { %s1209_s28 = smul.u32 24, %s449_s27 }
  0x1d   : > { %s457_s11 = scalar_lea.vmem %s1747_s3, %s1209_s28  ;;  %s452_s20 = scalar_lea.vmem %s1746_s2, %s1209_s28 }
  0x1e   : > { %v468_v1 = vld [vmem:[%s457_s11] sm:$0xff]  ;;  %v469_v3 = vld [vmem:[%s457_s11 + $0x8] sm:$0xff]  ;;  %s462_s21 = scalar_lea.vmem %s1748_s4, %s1209_s28  ;;  %v470_v7 = vld [vmem:[%s457_s11 + $0x10] sm:$0xff]  ;;  %s1585_s11 = sand.u32 1, %s1395_s14  }
  0x1f   : > { %v465_v2 = vld [vmem:[%s452_s20] sm:$0xff]  ;;  %534 = vperm.xlu1 %1276, %v468_v1   ;;  %v466_v4 = vld [vmem:[%s452_s20 + $0x8] sm:$0xff]  ;;  %v467_v8 = vld [vmem:[%s452_s20 + $0x10] sm:$0xff]  ;;  %s1208_s20 = smul.u32 48, %s1585_s11 }
  0x20   : > { %502 = vperm.xlu0 %1275, %v465_v2   ;;  %v472_v5 = vld [vmem:[%s462_s21 + $0x8] sm:$0xff]  ;;  %v471_v6 = vld [vmem:[%s462_s21] sm:$0xff]  ;;  %v473_v10 = vld [vmem:[%s462_s21 + $0x10] sm:$0xff]  ;;  %s1657_s21 = scalar_lea.hbm %s1753_s9, %s1210_s19 }
  0x21   : > { %s1588_s22 = scalar_lea.vmem [#allocation2], %s1208_s20 }
  0x22   : > { %s984_s28 = sshll.u32 %s1588_s22, 4  ;;  %s1651_s28 = int_to_ptr.vmem [resolvable:$true] %s984_s28 }
  0x23   : > { %539 = vperm.xlu1 %1276, %v469_v3   ;;  %s1301_s29 = scalar_lea.vmem %s1651_s28, 768  ;;  %p1308_p1 = scmp.lt.s32.totalorder %s1651_s28, %s1306_s12 }
  0x24   : > { %507 = vperm.xlu0 %1275, %v466_v4   ;;  %p1302_p12 = scmp.ne.s32.totalorder %s1651_s28, %s1301_s29 }
  0x26   : > { %p1303_p13 = pnand %p1302_p12, %p1514_p4 }
  0x27   : > { %577 = vperm.xlu1 %1276, %v472_v5  }
  0x28   : > { %572 = vperm.xlu0 %1275, %v471_v6   ;;  %p1304_p0 = pneg %p1303_p13 }
  0x2b   : > { %544 = vperm.xlu1 %1276, %v470_v7  }
  0x2c   : > { %512 = vperm.xlu0 %1275, %v467_v8  }
  0x2f   : > { %641 = vperm.xlu1 %1276, %v482_v9  }
  0x30   : > { %582 = vperm.xlu0 %1275, %v473_v10  }
  0x33   : > { %651 = vperm.xlu1 %1276, %v484_v11  }
  0x34   : > { %646 = vperm.xlu0 %1275, %v483_v12  }
  0x37   : > { %661 = vperm.xlu1 %1276, %v486_v13  }
  0x38   : > { %656 = vperm.xlu0 %1275, %v485_v14  }
  0x3b   : > { %671 = vperm.xlu1 %1276, %v488_v15  }
  0x3c   : > { %666 = vperm.xlu0 %1275, %v487_v16  }
  0x3f   : > { %835 = vperm.xlu1 %1276, %v494_v17  }
  0x40   : > { %676 = vperm.xlu0 %1275, %v489_v18  }
  0x43   : > { %845 = vperm.xlu1 %1276, %v496_v19  }
  0x44   : > { %840 = vperm.xlu0 %1275, %v495_v20  }
  0x48   : > { %850 = vperm.xlu0 %1275, %v497_v21  }
  0x9e   : > { %v535_v33 = vpop.permute.xlu1 %534 }
  0x9f   : > { %v503_v34 = vpop.permute.xlu0 %502  ;;  %v558_v35 = vmul.f32 %v551_v29, %v535_v33  ;;  %v559_v36 = vmul.f32 %v555_v30, %v535_v33 }
  0xa0   : > { %v526_v37 = vmul.f32 %v519_v31, %v503_v34  ;;  %v527_v38 = vmul.f32 %v523_v32, %v503_v34 }
  0xa2   : > { %v540_v39 = vpop.permute.xlu1 %539  ;;  %v564_v47 = vadd.f32 %v558_v35, %v526_v37  ;;  %v565_v48 = vadd.f32 %v559_v36, %v527_v38 }
  0xa3   : > { %v508_v40 = vpop.permute.xlu0 %507  ;;  %v560_v41 = vmul.f32 %v551_v29, %v540_v39  ;;  %v561_v42 = vmul.f32 %v555_v30, %v540_v39 }
  0xa4   : > { %v528_v43 = vmul.f32 %v519_v31, %v508_v40  ;;  %v529_v44 = vmul.f32 %v523_v32, %v508_v40 }
  0xa6   : > { %v566_v45 = vadd.f32 %v560_v41, %v528_v43  ;;  %v567_v46 = vadd.f32 %v561_v42, %v529_v44  ;;  %v578_v49 = vpop.permute.xlu1 %577 }
  0xa7   : > { %v573_v50 = vpop.permute.xlu0 %572 }
  0xa8   : > { %v587_v51 = vadd.f32 %v578_v49, %v566_v45  ;;  %v588_v52 = vadd.f32 %v578_v49, %v567_v46  ;;  %v585_v53 = vadd.f32 %v573_v50, %v564_v47  ;;  %v586_v54 = vadd.f32 %v573_v50, %v565_v48  ;;  %v474_v47 = vld [vmem:[%s1749_s5] sm:$0xff]  ;;  %v475_v48 = vld [vmem:[%s1749_s5 + $0x8] sm:$0xff]  ;;  %v476_v49 = vld [vmem:[%s1749_s5 + $0x10] sm:$0xff] }
  0xa9   : > { %v477_v50 = vld [vmem:[%s1749_s5 + $0x18] sm:$0xff] }
  0xaa   : > { %593 = vst [vmem:[%s1588_s22 + $0x10] sm:$0xff] %v587_v51  ;;  %594 = vst [vmem:[%s1588_s22 + $0x18] sm:$0xff] %v588_v52  ;;  %v599_v55 = vmax.f32 %v587_v51, 1e-05  ;;  %v600_v56 = vmax.f32 %v588_v52, 1e-05  ;;  %v545_v59 = vpop.permute.xlu1 %544 }
  0xab   : > { %591 = vst [vmem:[%s1588_s22] sm:$0xff] %v585_v53  ;;  %592 = vst [vmem:[%s1588_s22 + $0x8] sm:$0xff] %v586_v54  ;;  %v597_v57 = vmax.f32 %v585_v53, 1e-05  ;;  %v598_v58 = vmax.f32 %v586_v54, 1e-05  ;;  %v513_v60 = vpop.permute.xlu0 %512  ;;  %v562_v0 = vmul.f32 %v551_v29, %v545_v59  ;;  %v563_v2 = vmul.f32 %v555_v30, %v545_v59  ;;  %v478_v51 = vld [vmem:[%s1749_s5 + $0x20] sm:$0xff] }
  0xac   : > { %v605_v61 = vmin.f32 %v599_v55, 0.99999  ;;  %v606_v62 = vmin.f32 %v600_v56, 0.99999  ;;  %v530_v3 = vmul.f32 %v519_v31, %v513_v60  ;;  %v531_v4 = vmul.f32 %v523_v32, %v513_v60  ;;  %v479_v52 = vld [vmem:[%s1749_s5 + $0x28] sm:$0xff]  ;;  %v480_v53 = vld [vmem:[%s1749_s5 + $0x30] sm:$0xff] }
  0xad   : > { %v603_v63 = vmin.f32 %v597_v57, 0.99999  ;;  %v604_v1 = vmin.f32 %v598_v58, 0.99999  ;;  %v481_v54 = vld [vmem:[%s1749_s5 + $0x38] sm:$0xff] }
  0xae   : > { %v611_v5 = vsub.f32 1.0, %v605_v61  ;;  %v612_v6 = vsub.f32 1.0, %v606_v62  ;;  %v568_v9 = vadd.f32 %v562_v0, %v530_v3  ;;  %v569_v10 = vadd.f32 %v563_v2, %v531_v4  ;;  %v642_v57 = vpop.permute.xlu1 %641 }
  0xaf   : > { %v609_v7 = vsub.f32 1.0, %v603_v63  ;;  %v610_v8 = vsub.f32 1.0, %v604_v1  ;;  %v583_v11 = vpop.permute.xlu0 %582 }
  0xb0   : > { %1277 = vrcp.f32 %v611_v5  ;;  %v589_v12 = vadd.f32 %v583_v11, %v568_v9  ;;  %v590_v13 = vadd.f32 %v583_v11, %v569_v10 }
  0xb1   : > { %1279 = vrcp.f32 %v612_v6 }
  0xb2   : > { %1281 = vrcp.f32 %v609_v7  ;;  %595 = vst [vmem:[%s1588_s22 + $0x20] sm:$0xff] %v589_v12  ;;  %596 = vst [vmem:[%s1588_s22 + $0x28] sm:$0xff] %v590_v13  ;;  %v601_v14 = vmax.f32 %v589_v12, 1e-05  ;;  %v602_v15 = vmax.f32 %v590_v13, 1e-05 }
  0xb3   : > { %1283 = vrcp.f32 %v610_v8  ;;  %v647_v59 = vpop.permute.xlu0 %646  ;;  %v652_v8 = vpop.permute.xlu1 %651  ;;  %s1307_s22 = scalar_lea.vmem %s1306_s12, 1536 }
  0xb4   : > { %v607_v16 = vmin.f32 %v601_v14, 0.99999  ;;  %v608_v17 = vmin.f32 %v602_v15, 0.99999  ;;  %p1309_p2 = scmp.lt.s32.totalorder %s1307_s22, %s1301_s29 }
  0xb6   : > { %v613_v18 = vsub.f32 1.0, %v607_v16  ;;  %v614_v19 = vsub.f32 1.0, %v608_v17  ;;  %p1310_p3 = por %p1309_p2, %p1308_p1 }
  0xb7   : > { %v657_v11 = vpop.permute.xlu0 %656 }
  0xb8   : > { %1285 = vrcp.f32 %v613_v18  ;;  %p1311_p5 = pnand %p1310_p3, %p1304_p0 }
  0xb9   : > { %1287 = vrcp.f32 %v614_v19 }
  0xba   : > { %v1278_v20 = vpop.eup %1277 }
  0xbb   : > { %v1280_v21 = vpop.eup %1279  ;;  %v623_v23 = vmul.f32 %v1278_v20, %v605_v61 }
  0xbc   : > { %v1282_v24 = vpop.eup %1281  ;;  %v624_v25 = vmul.f32 %v1280_v21, %v606_v62 }
  0xbd   : > { %v1284_v26 = vpop.eup %1283  ;;  %v621_v27 = vmul.f32 %v1282_v24, %v603_v63  ;;  %1289 = vlog2.f32 %v623_v23 }
  0xbe   : > { %v622_v28 = vmul.f32 %v1284_v26, %v604_v1  ;;  %1291 = vlog2.f32 %v624_v25  ;;  %v662_v25 = vpop.permute.xlu1 %661 }
  0xbf   : > { %1293 = vlog2.f32 %v621_v27 }
  0xc0   : > { %1295 = vlog2.f32 %v622_v28  ;;  %v667_v28 = vpop.permute.xlu0 %666 }
  0xc2   : > { %v1286_v29 = vpop.eup %1285 }
  0xc3   : > { %v1288_v30 = vpop.eup %1287  ;;  %v625_v31 = vmul.f32 %v1286_v29, %v607_v16 }
  0xc4   : > { %v626_v32 = vmul.f32 %v1288_v30, %v608_v17 }
  0xc5   : > { %1297 = vlog2.f32 %v625_v31 }
  0xc6   : > { %1299 = vlog2.f32 %v626_v32 }
  0xc7   : > { %v1290_v33 = vpop.eup %1289 }
  0xc8   : > { %v1292_v34 = vpop.eup %1291  ;;  %v632_v35 = vmul.f32 0.6931472, %v1290_v33 }
  0xc9   : > { %v1294_v36 = vpop.eup %1293  ;;  %v634_v37 = vmul.f32 0.6931472, %v1292_v34 }
  0xca   : > { %v1296_v38 = vpop.eup %1295  ;;  %v628_v39 = vmul.f32 0.6931472, %v1294_v36 }
  0xcb   : > { %v630_v40 = vmul.f32 0.6931472, %v1296_v38 }
  0xcc   : > { %v1190_v41 = vpack.c.bf16 %v632_v35, %v628_v39 }
  0xcd   : > { %v1188_v42 = vpack.c.bf16 %v634_v37, %v630_v40 }
  0xcf   : > { %1189 = vmatprep.subr.bf16.mxu0 %v1188_v42  ;;  %v1298_v43 = vpop.eup %1297 }
  0xd0   : > { %1191 = vmatpush1.bf16.msra.mxu0 %v1190_v41  ;;  %v1300_v44 = vpop.eup %1299  ;;  %v636_v45 = vmul.f32 0.6931472, %v1298_v43  ;;  %v672_v41 = vpop.permute.xlu1 %671 }
  0xd1   : > { %v638_v46 = vmul.f32 0.6931472, %v1300_v44  ;;  %v677_v44 = vpop.permute.xlu0 %676 }
  0xd3   : > { %708 = vmatprep.subr.mxu0 %v638_v46 }
  0xd4   : > { %709 = vmatpush1.msra.mxu0 %v636_v45 }
  0xd5   : > { %1169 = vmatmul.mubr.msk.f32.vlgmr.msra.gmra.mrb[0].mxu0 %vm679_vm0, %v474_v47 }
  0xd6   : > { %774 = vmatprep.mubr.f32.mxu0 %v1414_v22 }
  0xd9   : > { %1170 = vmatmul.mubr.msk.f32.gmra.mrb[2].mxu0 %vm679_vm0, %v475_v48 }
  0xda   : > { %780 = vmatprep.mubr.f32.mxu0 %v1414_v22 }
  0xdd   : > { %1171 = vmatmul.mubr.msk.f32.gmra.mrb[4].mxu0 %vm679_vm0, %v476_v49 }
  0xde   : > { %786 = vmatprep.mubr.f32.mxu0 %v1414_v22 }
  0xe1   : > { %1172 = vmatmul.mubr.msk.f32.gmra.mrb[6].mxu0 %vm679_vm0, %v477_v50 }
  0xe2   : > { %792 = vmatprep.mubr.f32.mxu0 %v1414_v22 }
  0xe5   : > { %1173 = vmatmul.mubr.msk.f32.gmra.mrb[8].mxu0 %vm679_vm0, %v478_v51 }
  0xe6   : > { %798 = vmatprep.mubr.f32.mxu0 %v1414_v22 }
  0xe9   : > { %1174 = vmatmul.mubr.msk.f32.gmra.mrb[10].mxu0 %vm679_vm0, %v479_v52 }
  0xea   : > { %804 = vmatprep.mubr.f32.mxu0 %v1414_v22 }
  0xed   : > { %1175 = vmatmul.mubr.msk.f32.gmra.mrb[12].mxu0 %vm679_vm0, %v480_v53 }
  0xee   : > { %810 = vmatprep.mubr.f32.mxu0 %v1414_v22 }
  0xf1   : > { %1176 = vmatmul.mubr.msk.f32.gmra.mrb[14].mxu0 %vm679_vm0, %v481_v54 }
 0x1a8   : > { %v770_v55 = vpop.f32.mrb[0].mxu0 }
 0x1a9   : > { %v772_v56 = vpop.f32.mrb[1].mxu0  ;;  %v771_v58 = vadd.f32 %v770_v55, %v642_v57 }
 0x1aa   : > { %v773_v60 = vadd.f32 %v772_v56, %v642_v57  ;;  %v490_v56 = vld [vmem:[%s1751_s7] sm:$0xff]  ;;  %v491_v57 = vld [vmem:[%s1751_s7 + $0x8] sm:$0xff] }
 0x1ab   : > { %v817_v1 = vmax.f32 %v771_v58, 0.0  ;;  %v492_v58 = vld [vmem:[%s1751_s7 + $0x10] sm:$0xff] }
 0x1ac   : > { %v776_v61 = vpop.f32.mrb[2].mxu0  ;;  %v818_v3 = vmax.f32 %v773_v60, 0.0 }
 0x1ad   : > { %v777_v62 = vadd.f32 %v776_v61, %v647_v59  ;;  %v778_v63 = vpop.f32.mrb[3].mxu0 }
 0x1ae   : > { %v779_v0 = vadd.f32 %v778_v63, %v647_v59  ;;  %v493_v59 = vld [vmem:[%s1751_s7 + $0x18] sm:$0xff] }
 0x1af   : > { %v819_v2 = vmax.f32 %v777_v62, 0.0 }
 0x1b0   : > { %v820_v4 = vmax.f32 %v779_v0, 0.0  ;;  %v782_v5 = vpop.f32.mrb[4].mxu0 }
 0x1b1   : > { %v784_v6 = vpop.f32.mrb[5].mxu0  ;;  %v1194_v7 = vpack.c.bf16 %v819_v2, %v817_v1  ;;  %v783_v10 = vadd.f32 %v782_v5, %v652_v8 }
 0x1b2   : > { %v1192_v9 = vpack.c.bf16 %v820_v4, %v818_v3  ;;  %v785_v12 = vadd.f32 %v784_v6, %v652_v8 }
 0x1b3   : > { %v821_v17 = vmax.f32 %v783_v10, 0.0 }
 0x1b4   : > { %v788_v13 = vpop.f32.mrb[6].mxu0  ;;  %1193 = vmatprep.subr.bf16.mxu1 %v1192_v9  ;;  %v822_v19 = vmax.f32 %v785_v12, 0.0 }
 0x1b5   : > { %v789_v14 = vadd.f32 %v788_v13, %v657_v11  ;;  %v790_v15 = vpop.f32.mrb[7].mxu0  ;;  %1195 = vmatpush1.bf16.msra.mxu1 %v1194_v7 }
 0x1b6   : > { %v791_v16 = vadd.f32 %v790_v15, %v657_v11 }
 0x1b7   : > { %v823_v18 = vmax.f32 %v789_v14, 0.0 }
 0x1b8   : > { %v824_v20 = vmax.f32 %v791_v16, 0.0  ;;  %v794_v21 = vpop.f32.mrb[8].mxu0 }
 0x1b9   : > { %v1198_v23 = vpack.c.bf16 %v823_v18, %v821_v17  ;;  %v796_v24 = vpop.f32.mrb[9].mxu0  ;;  %v795_v27 = vadd.f32 %v794_v21, %v662_v25 }
 0x1ba   : > { %v1196_v26 = vpack.c.bf16 %v824_v20, %v822_v19  ;;  %v797_v29 = vadd.f32 %v796_v24, %v662_v25 }
 0x1bb   : > { %v825_v34 = vmax.f32 %v795_v27, 0.0 }
 0x1bc   : > { %v800_v30 = vpop.f32.mrb[10].mxu0  ;;  %1197 = vmatprep.subr.bf16.mxu1 %v1196_v26  ;;  %v826_v36 = vmax.f32 %v797_v29, 0.0 }
 0x1bd   : > { %v801_v31 = vadd.f32 %v800_v30, %v667_v28  ;;  %v802_v32 = vpop.f32.mrb[11].mxu0  ;;  %1199 = vmatpush1.bf16.msra.mxu1 %v1198_v23 }
 0x1be   : > { %v803_v33 = vadd.f32 %v802_v32, %v667_v28 }
 0x1bf   : > { %v827_v35 = vmax.f32 %v801_v31, 0.0 }
 0x1c0   : > { %v828_v37 = vmax.f32 %v803_v33, 0.0  ;;  %v806_v38 = vpop.f32.mrb[12].mxu0 }
 0x1c1   : > { %v1202_v39 = vpack.c.bf16 %v827_v35, %v825_v34  ;;  %v808_v40 = vpop.f32.mrb[13].mxu0  ;;  %v807_v43 = vadd.f32 %v806_v38, %v672_v41 }
 0x1c2   : > { %v1200_v42 = vpack.c.bf16 %v828_v37, %v826_v36  ;;  %v809_v45 = vadd.f32 %v808_v40, %v672_v41 }
 0x1c3   : > { %v829_v50 = vmax.f32 %v807_v43, 0.0 }
 0x1c4   : > { %v812_v46 = vpop.f32.mrb[14].mxu0  ;;  %1201 = vmatprep.subr.bf16.mxu1 %v1200_v42  ;;  %v830_v52 = vmax.f32 %v809_v45, 0.0 }
 0x1c5   : > { %v813_v47 = vadd.f32 %v812_v46, %v677_v44  ;;  %v814_v48 = vpop.f32.mrb[15].mxu0  ;;  %1203 = vmatpush1.bf16.msra.mxu1 %v1202_v39 }
 0x1c6   : > { %v815_v49 = vadd.f32 %v814_v48, %v677_v44 }
 0x1c7   : > { %v831_v51 = vmax.f32 %v813_v47, 0.0 }
 0x1c8   : > { %v832_v53 = vmax.f32 %v815_v49, 0.0 }
 0x1c9   : > { %v1206_v54 = vpack.c.bf16 %v831_v51, %v829_v50 }
 0x1ca   : > { %v1204_v55 = vpack.c.bf16 %v832_v53, %v830_v52 }
 0x1cc   : > { %1205 = vmatprep.subr.bf16.mxu1 %v1204_v55 }
 0x1cd   : > { %1207 = vmatpush1.bf16.msra.mxu1 %v1206_v54 }
 0x1d0   : > { %1177 = vmatmul.mubr.msk.f32.vlgmr.msra.gmra.mrb[0].mxu1 %vm853_vm1, %v490_v56 }
 0x1d1   : > { %936 = vmatprep.mubr.f32.mxu1 %v1414_v22 }
 0x1d4   : > { %1178 = vmatmul.mubr.msk.f32.gmra.mrb[2].mxu1 %vm853_vm1, %v491_v57 }
 0x1d5   : > { %942 = vmatprep.mubr.f32.mxu1 %v1414_v22 }
 0x1d8   : > { %1179 = vmatmul.mubr.msk.f32.gmra.mrb[4].mxu1 %vm853_vm1, %v492_v58 }
 0x1d9   : > { %948 = vmatprep.mubr.f32.mxu1 %v1414_v22 }
 0x1dc   : > { %1180 = vmatmul.mubr.msk.f32.gmra.mrb[6].mxu1 %vm853_vm1, %v493_v59 }
 0x1dd   : > { %1314 = shalt.err (!%p1311_p5)
}
 0x1de   : > { %s1315_s19 = scalar_lea.hbm %s1657_s21, 768  ;;  %s1319_s30 = scalar_lea.hbm %s1753_s9, 1536 }
 0x1df   : > { %p1316_p6 = scmp.ne.s32.totalorder %s1657_s21, %s1315_s19  ;;  %p1320_p10 = scmp.lt.u32.totalorder %s1657_s21, %s1753_s9 }
 0x1e0   : > { %p1321_p11 = scmp.lt.u32.totalorder %s1319_s30, %s1315_s19  ;;  %p1323_p13 = scmp.lt.u32.totalorder %s1315_s19, %s1657_s21 }
 0x1e1   : > { %p1317_p7 = pnand %p1316_p6, %p1514_p4 }
 0x1e2   : > { %p1322_p12 = por %p1321_p11, %p1320_p10 }
 0x1e3   : > { %p1318_p9 = pneg %p1317_p7 }
 0x1e4   : > { %p1324_p0 = por %p1323_p13, %p1322_p12 }
 0x1e6   : > { %p1325_p1 = pnand %p1324_p0, %p1318_p9 }
 0x1e8   : > { %1328 = shalt.err (!%p1325_p1)
}
 0x1e9   : > { %s1756_s29 = smov 256   ;;  %s1757_s22 = smov 16   ;;  %v836_v22 = vpop.permute.xlu1 %835  ;;  %v841_v0 = vpop.permute.xlu0 %840 }
 0x1ea   : > { %s1761_s20 = scalar_lea.sflag [#allocation3], %s1585_s11  ;;  %s1165_s27 = sshll.u32 %s1585_s11, 6 }
 0x1eb   : > { %1211 = dma.vmem_to_hbm [thread:$0]  (%p1514_p4), %s1651_s28, 768, %s1657_s21, %s1761_s20, %s1756_s29, %s1756_s29, %s1757_s22  }
 0x1ec   : > { %s437_s19 = scalar_lea.vmem [#allocation4], %s1165_s27  ;;  %s1187_s28 = sshll.u32 %s1403_s16, 10 }
 0x1ed   : > { %v846_v5 = vpop.permute.xlu1 %845  ;;  %s1002_s21 = sshll.u32 %s437_s19, 4  ;;  %v851_v10 = vpop.permute.xlu0 %850  ;;  %s1691_s12 = scalar_lea.hbm %s1754_s10, %s1187_s28  ;;  %s1693_s21 = int_to_ptr.vmem [resolvable:$true] %s1002_s21 }
 0x1ee   : > { %s969_s16 = scalar_lea.sflag [#allocation5], %s1585_s11  ;;  %s1329_s20 = scalar_lea.vmem %s1693_s21, 1024 }
 0x1ef   : > { %p1330_p2 = scmp.ne.s32.totalorder %s1693_s21, %s1329_s20  ;;  %s1418_s27 = smov [#allocation4]  }
 0x1f0   : > { %s1333_s29 = sshll.u32 %s1418_s27, 4  ;;  %s1334_s29 = int_to_ptr.vmem [resolvable:$false] %s1333_s29 }
 0x1f1   : > { %p1331_p3 = pnand %p1330_p2, %p1514_p4  ;;  %s1335_s22 = scalar_lea.vmem %s1334_s29, 2048 }
 0x1f2   : > { %p1336_p6 = scmp.lt.s32.totalorder %s1693_s21, %s1334_s29  ;;  %p1337_p7 = scmp.lt.s32.totalorder %s1335_s22, %s1329_s20 }
 0x1f3   : > { %p1332_p5 = pneg %p1331_p3 }
 0x1f4   : > { %p1338_p9 = por %p1337_p7, %p1336_p6 }
 0x1f6   : > { %p1339_p10 = pnand %p1338_p9, %p1332_p5 }
 0x2a3   : > { %v932_v60 = vpop.f32.mrb[0].mxu1 }
 0x2a4   : > { %v933_v61 = vadd.f32 %v932_v60, %v836_v22  ;;  %v934_v62 = vpop.f32.mrb[1].mxu1 }
 0x2a5   : > { %v935_v63 = vadd.f32 %v934_v62, %v836_v22 }
 0x2a6   : > { %955 = vst [vmem:[%s437_s19] sm:$0xff] %v933_v61 }
 0x2a7   : > { %956 = vst [vmem:[%s437_s19 + $0x8] sm:$0xff] %v935_v63  ;;  %v938_v1 = vpop.f32.mrb[2].mxu1 }
 0x2a8   : > { %v939_v2 = vadd.f32 %v938_v1, %v841_v0  ;;  %v940_v3 = vpop.f32.mrb[3].mxu1 }
 0x2a9   : > { %v941_v4 = vadd.f32 %v940_v3, %v841_v0 }
 0x2aa   : > { %957 = vst [vmem:[%s437_s19 + $0x10] sm:$0xff] %v939_v2 }
 0x2ab   : > { %958 = vst [vmem:[%s437_s19 + $0x18] sm:$0xff] %v941_v4  ;;  %v944_v6 = vpop.f32.mrb[4].mxu1 }
 0x2ac   : > { %v945_v7 = vadd.f32 %v944_v6, %v846_v5  ;;  %v946_v8 = vpop.f32.mrb[5].mxu1 }
 0x2ad   : > { %v947_v9 = vadd.f32 %v946_v8, %v846_v5 }
 0x2ae   : > { %959 = vst [vmem:[%s437_s19 + $0x20] sm:$0xff] %v945_v7 }
 0x2af   : > { %960 = vst [vmem:[%s437_s19 + $0x28] sm:$0xff] %v947_v9  ;;  %v950_v11 = vpop.f32.mrb[6].mxu1 }
 0x2b0   : > { %v951_v12 = vadd.f32 %v950_v11, %v851_v10  ;;  %v952_v13 = vpop.f32.mrb[7].mxu1 }
 0x2b1   : > { %v953_v14 = vadd.f32 %v952_v13, %v851_v10 }
 0x2b2   : > { %961 = vst [vmem:[%s437_s19 + $0x30] sm:$0xff] %v951_v12 }
 0x2b3   : > { %962 = vst [vmem:[%s437_s19 + $0x38] sm:$0xff] %v953_v14 }
 0x2b4   : > { %1342 = shalt.err (!%p1339_p10)
}
 0x2b5   : > { %s1343_s19 = scalar_lea.hbm %s1691_s12, 1024  ;;  %s1347_s30 = scalar_lea.hbm %s1754_s10, 2048 }
 0x2b6   : > { %p1344_p11 = scmp.ne.s32.totalorder %s1691_s12, %s1343_s19  ;;  %p1348_p0 = scmp.lt.u32.totalorder %s1691_s12, %s1754_s10 }
 0x2b7   : > { %p1349_p1 = scmp.lt.u32.totalorder %s1347_s30, %s1343_s19  ;;  %p1351_p3 = scmp.lt.u32.totalorder %s1343_s19, %s1691_s12 }
 0x2b8   : > { %p1345_p12 = pnand %p1344_p11, %p1514_p4 }
 0x2b9   : > { %p1350_p2 = por %p1349_p1, %p1348_p0 }
 0x2ba   : > { %p1346_p13 = pneg %p1345_p12 }
 0x2bb   : > { %p1352_p5 = por %p1351_p3, %p1350_p2 }
 0x2bd   : > { %p1353_p6 = pnand %p1352_p5, %p1346_p13 }
 0x2bf   : > { %1356 = shalt.err (!%p1353_p6)
}
 0x2c0   : > { %s1762_s22 = smov 16   ;;  %s1763_s20 = smov 256  }
 0x2c1   : > { %1212 = dma.vmem_to_hbm [thread:$0]  (%p1514_p4), %s1693_s21, 1024, %s1691_s12, %s969_s16, %s1763_s20, %s1763_s20, %s1762_s22  }
 0x2c2 PF: > { %p1222_p7 = scmp.ge.s32.totalorder %s1411_s18, 2  ;;  %s1017_s28 = sand.u32 1, %s1391_s13  }
 0x2c3   : > { %s1018_s19 = scalar_lea.sflag [#allocation3], %s1017_s28 }
 0x2c4   : > { %p1216_p9 = pnand %p1222_p7, %p1521_p8 }
 0x2c6   : > { %1382 = dma.done.wait (!%p1216_p9), %s1018_s19, 768  }
 0x2c7   : > { %1384 = vsyncadd (!%p1216_p9), %s1018_s19, 4294966528  ;;  %s1027_s23 = scalar_lea.sflag [#allocation5], %s1017_s28 }
 0x2c8   : > { %1386 = dma.done.wait (!%p1216_p9), %s1027_s23, 1024  }
 0x2c9   : > { %1388 = vsyncadd (!%p1216_p9), %s1027_s23, 4294966272  ;;  %s27_s18 = sadd.s32 1, %s1411_s18   ;;  %s1764_s11 = sld [smem:[#allocation8_spill]] }
 0x2ca   : > { %p24_p10 = scmp.ge.s32.totalorder %s27_s18, 4   ;;  %s1765_s13 = smov %s1395_s14 }
 0x2cb   : > { %s1766_s14 = smov %s1399_s15  ;;  %s1767_s15 = smov %s1527_s26 }
 0x2cc   : > { %s1768_s16 = smov %s1407_s17  ;;  %26 = sbr.rel (!%p24_p10) target bundleno = 6 (0x6), region = 120 }
 0x2cf   : > { %s1769_s17 = smov %s1764_s11 }
 0x2d3   :  { %1032 = vsyncpa [#allocation3], 1 }
 0x2d4   :  { %1034 = vsyncpa [#allocation3 + $0x1], 1 }
 0x2d5   :  { %1035 = vsyncpa [#allocation5], 1 }
 0x2d6   :  { %1037 = vsyncpa [#allocation5 + $0x1], 1 }

</bundles_post_ra>
